<compile_context>
chip_gen: v5e
topology: v5e:2x2
jax: 0.10.0
libtpu: 0.0.40
codegen_flags: <defaults>
</compile_context>

<pallas_src>
import math
from typing import NamedTuple

import jax
import jax.numpy as jnp
from jax.experimental import pallas as pl
from jax.experimental.pallas import tpu as pltpu


def _round_up(x: int, m: int) -> int:
    return (x + m - 1) // m * m


# -----------------------------------------------------------------------------
# Static dimension / packing layout
# -----------------------------------------------------------------------------
class _Dims(NamedTuple):
    num_items: int
    E: int
    H: int
    H2: int
    H3: int
    H4: int
    in_dim: int
    in_pad: int
    dE: int
    lane_w: int
    row_off: tuple
    w_rows: int
    vec_rows: int


def _dims(num_items: int, embedding_dim: int, hidden_dim: int) -> _Dims:
    N, E, H = num_items, embedding_dim, hidden_dim
    H2, H3, H4 = H // 2, H // 4, H // 8
    dE = 4 * E
    in_dim = 3 * N + 1                       # [sel | budget | u | t]
    in_pad = _round_up(in_dim, 64)
    lane_w = _round_up(max(dE, H), 128)
    # Row segments inside the single weight slab: W_emb, w1, w2, w3, w4.
    # Offsets are multiples of 16 so bf16 (16, 128) sublane tiles stay aligned.
    off, cur = [], 0
    for rows in (in_pad, dE, H, H2, H3):
        off.append(cur)
        cur += _round_up(rows, 16)
    return _Dims(N, E, H, H2, H3, H4, in_dim, in_pad, dE, lane_w,
                 tuple(off), cur, 16)


# -----------------------------------------------------------------------------
# Parameter packing (done ONCE, outside the per-call wrapper)
# -----------------------------------------------------------------------------
def pack_params(params, num_items, embedding_dim, hidden_dim,
                matmul_dtype=jnp.bfloat16):
    """Pack MXU weights into one [rows, 128] slab (matmul dtype) and all
    biases / LayerNorm params / the fc5 weight into one [16, 128] f32 slab."""
    d = _dims(num_items, embedding_dim, hidden_dim)
    N, E, H, H2, H3, H4 = d.num_items, d.E, d.H, d.H2, d.H3, d.H4
    o = d.row_off
    f32 = jnp.float32

    W = jnp.zeros((d.w_rows, d.lane_w), f32)
    # Block-diagonal fused embedding weight for x = [sel | bud | u | t | 0pad].
    W = W.at[0:N, 0:E].set(params["w_sel"])
    W = W.at[N:N + 1, E:2 * E].set(params["w_bud"])
    W = W.at[N + 1:2 * N + 1, 2 * E:3 * E].set(params["w_u"])
    W = W.at[2 * N + 1:3 * N + 1, 3 * E:4 * E].set(params["w_t"])
    # fc1..fc4 (batch-major).
    W = W.at[o[1]:o[1] + d.dE, 0:H].set(params["w1"])
    W = W.at[o[2]:o[2] + H, 0:H2].set(params["w2"])
    W = W.at[o[3]:o[3] + H2, 0:H3].set(params["w3"])
    W = W.at[o[4]:o[4] + H3, 0:H4].set(params["w4"])

    V = jnp.zeros((d.vec_rows, d.lane_w), f32)

    def put(v, row, vec):
        vec = vec.reshape(1, -1)
        return v.at[row:row + 1, 0:vec.shape[-1]].set(vec)

    b_emb = jnp.concatenate(
        [params["b_sel"], params["b_bud"], params["b_u"], params["b_t"]], axis=1)
    V = put(V, 0, b_emb)
    V = put(V, 1, params["b1"]);  V = put(V, 2, params["g1"]);  V = put(V, 3, params["be1"])
    V = put(V, 4, params["b2"]);  V = put(V, 5, params["g2"]);  V = put(V, 6, params["be2"])
    V = put(V, 7, params["b3"]);  V = put(V, 8, params["g3"]);  V = put(V, 9, params["be3"])
    V = put(V, 10, params["b4"]); V = put(V, 11, params["g4"]); V = put(V, 12, params["be4"])
    V = put(V, 13, params["b5"])
    V = put(V, 14, params["w5"].reshape(1, -1))   # fc5 weight as an f32 row (w5^T)
    return W.astype(matmul_dtype), V


# -----------------------------------------------------------------------------
# Kernel
# -----------------------------------------------------------------------------
def _ln_relu(x, gamma, beta, eps=1e-5):
    # Single-pass LayerNorm (biased variance, PyTorch eps) fused with ReLU.
    inv_n = 1.0 / x.shape[-1]
    mu = jnp.sum(x, axis=-1, keepdims=True) * inv_n
    ms = jnp.sum(x * x, axis=-1, keepdims=True) * inv_n
    var = ms - mu * mu
    y = (x - mu) * jax.lax.rsqrt(var + eps) * gamma + beta
    return jnp.maximum(y, 0.0)


def _make_kernel(d: _Dims, matmul_dtype):
    o = d.row_off
    f32 = jnp.float32

    def kernel(sel_ref, bud_ref, u_ref, t_ref, w_ref, vec_ref, out_ref):
        def dense(xv, seg, k, n, bias_row):
            w = w_ref[o[seg]:o[seg] + k, 0:n]              # static slice of slab
            b = vec_ref[bias_row:bias_row + 1, 0:n]
            return jnp.dot(xv.astype(matmul_dtype), w,
                           preferred_element_type=f32) + b

        def gb(row, n):
            return vec_ref[row:row + 1, 0:n]

        bt = sel_ref.shape[0]
        # In-kernel assembly of x = [sel | bud | u | t | zero-pad] (no HBM concat).
        pieces = [sel_ref[...], bud_ref[...], u_ref[...], t_ref[...]]
        if d.in_pad > d.in_dim:
            pieces.append(jnp.zeros((bt, d.in_pad - d.in_dim), f32))
        x = jnp.concatenate(pieces, axis=-1)               # [bt, in_pad] f32

        # Fused embeddings (4 Linears incl. the budget path) + ReLU, one matmul.
        emb = jnp.maximum(dense(x, 0, d.in_pad, d.dE, 0), 0.0)
        # fc1..fc4, each followed by LayerNorm + ReLU (f32 VPU/EUP math).
        h = _ln_relu(dense(emb, 1, d.dE, d.H, 1), gb(2, d.H), gb(3, d.H))
        h = _ln_relu(dense(h, 2, d.H, d.H2, 4), gb(5, d.H2), gb(6, d.H2))
        h = _ln_relu(dense(h, 3, d.H2, d.H3, 7), gb(8, d.H3), gb(9, d.H3))
        h = _ln_relu(dense(h, 4, d.H3, d.H4, 10), gb(11, d.H4), gb(12, d.H4))

        # fc5 feature-major: put the batch on lanes so the output row is
        # lane-dense ([1, bt], 4 B/sample) and fc5 costs a single MXU push.
        w5 = vec_ref[14:15, 0:d.H4]                        # f32 [1, H4]
        b5 = vec_ref[13:14, 0:1]                           # f32 [1, 1]
        logits = jnp.dot(w5, h.T, preferred_element_type=f32) + b5   # [1, bt]
        out_ref[...] = jax.nn.sigmoid(logits).reshape(out_ref.shape)

    return kernel


def _cost_estimate(d: _Dims, B, w_slab, vec_slab):
    flops = 2 * B * (d.in_dim * d.dE + d.dE * d.H + d.H * d.H2 +
                     d.H2 * d.H3 + d.H3 * d.H4 + d.H4)
    slab_bytes = (w_slab.size * w_slab.dtype.itemsize
                  + vec_slab.size * vec_slab.dtype.itemsize)
    bytes_accessed = B * (d.in_dim * 4 + 4) + slab_bytes
    return pl.CostEstimate(flops=flops, transcendentals=6 * B,
                           bytes_accessed=bytes_accessed)


# -----------------------------------------------------------------------------
# Wrapper
# -----------------------------------------------------------------------------
def gflownet_forward(selected, budget, u, t, w_slab, vec_slab, *,
                     num_items, embedding_dim, hidden_dim, batch_tile=1024):
    d = _dims(num_items, embedding_dim, hidden_dim)
    B = selected.shape[0]
    f32 = jnp.float32
    selected = selected.astype(f32)
    budget = budget.astype(f32)
    u = u.astype(f32)
    t = t.astype(f32)

    kernel = _make_kernel(d, w_slab.dtype)
    cost = _cost_estimate(d, B, w_slab, vec_slab)

    if B <= batch_tile:
        # Tiny-batch / latency path: everything is a single VMEM-resident block.
        out = pl.pallas_call(
            kernel,
            out_shape=jax.ShapeDtypeStruct((1, B), jnp.float32),
            cost_estimate=cost,
        )(selected, budget, u, t, w_slab, vec_slab)
        return out.reshape(B, 1)

    # Large-batch path: 1-D "parallel" grid over batch; weight / bias slabs
    # stay VMEM-resident (constant (0,0) index_map -> fetched once); the four
    # narrow input tiles and the lane-dense [1, batch_tile] output are pipelined.
    # NOTE: pick batch_tile so Bp // batch_tile is >= 2 and even when targeting
    # v7x, so both TensorCores get work on the "parallel" axis.
    Bp = _round_up(B, batch_tile)
    if Bp != B:
        # Ragged tail: pad only the four narrow inputs (cheap vs padding a
        # materialized concat).  Padded rows produce finite garbage, sliced off.
        pad = lambda a: jnp.pad(a, ((0, Bp - B), (0, 0)))
        selected, budget, u, t = pad(selected), pad(budget), pad(u), pad(t)
    n_tiles = Bp // batch_tile

    out = pl.pallas_call(
        kernel,
        out_shape=jax.ShapeDtypeStruct((n_tiles, 1, batch_tile), jnp.float32),
        grid_spec=pltpu.PrefetchScalarGridSpec(
            num_scalar_prefetch=0,
            grid=(n_tiles,),
            in_specs=[
                pl.BlockSpec((batch_tile, num_items), lambda i: (i, 0)),
                pl.BlockSpec((batch_tile, 1), lambda i: (i, 0)),
                pl.BlockSpec((batch_tile, num_items), lambda i: (i, 0)),
                pl.BlockSpec((batch_tile, num_items), lambda i: (i, 0)),
                pl.BlockSpec(w_slab.shape, lambda i: (0, 0)),
                pl.BlockSpec(vec_slab.shape, lambda i: (0, 0)),
            ],
            out_specs=pl.BlockSpec((1, 1, batch_tile), lambda i: (i, 0, 0)),
        ),
        compiler_params=pltpu.CompilerParams(
            dimension_semantics=("parallel",)),
        cost_estimate=cost,
    )(selected, budget, u, t, w_slab, vec_slab)
    return out.reshape(Bp, 1)[:B]


# -----------------------------------------------------------------------------
# Deterministic parameter init (PyTorch-style uniform(-1/sqrt(fan_in), +))
# -----------------------------------------------------------------------------
def _linear_init(key, fan_in, fan_out):
    kw, kb = jax.random.split(key)
    bound = 1.0 / math.sqrt(fan_in)
    w = jax.random.uniform(kw, (fan_in, fan_out), jnp.float32, -bound, bound)
    b = jax.random.uniform(kb, (1, fan_out), jnp.float32, -bound, bound)
    return w, b


def make_params(key, num_items, embedding_dim, hidden_dim):
    keys = jax.random.split(key, 16)
    p = {}
    p["w_sel"], p["b_sel"] = _linear_init(keys[0], num_items, embedding_dim)
    p["w_bud"], p["b_bud"] = _linear_init(keys[1], 1, embedding_dim)
    p["w_u"], p["b_u"] = _linear_init(keys[2], num_items, embedding_dim)
    p["w_t"], p["b_t"] = _linear_init(keys[3], num_items, embedding_dim)

    dims = [4 * embedding_dim, hidden_dim, hidden_dim // 2, hidden_dim // 4,
            hidden_dim // 8, 1]
    p["w1"], p["b1"] = _linear_init(keys[4], dims[0], dims[1])
    p["g1"], p["be1"] = jnp.ones((1, dims[1]), jnp.float32), jnp.zeros((1, dims[1]), jnp.float32)
    p["w2"], p["b2"] = _linear_init(keys[5], dims[1], dims[2])
    p["g2"], p["be2"] = jnp.ones((1, dims[2]), jnp.float32), jnp.zeros((1, dims[2]), jnp.float32)
    p["w3"], p["b3"] = _linear_init(keys[6], dims[2], dims[3])
    p["g3"], p["be3"] = jnp.ones((1, dims[3]), jnp.float32), jnp.zeros((1, dims[3]), jnp.float32)
    p["w4"], p["b4"] = _linear_init(keys[7], dims[3], dims[4])
    p["g4"], p["be4"] = jnp.ones((1, dims[4]), jnp.float32), jnp.zeros((1, dims[4]), jnp.float32)
    p["w5"], p["b5"] = _linear_init(keys[8], dims[4], dims[5])
    # log_z parameter exists in the module but is unused by forward().
    p["log_z"] = jnp.float32(12.0)
    return p


# -----------------------------------------------------------------------------
# Plain-JAX reference (sanity check)
# -----------------------------------------------------------------------------
def reference_forward(selected, budget, u, t, p):
    def ln(x, g, b, eps=1e-5):
        mu = x.mean(-1, keepdims=True)
        var = ((x - mu) ** 2).mean(-1, keepdims=True)
        return (x - mu) / jnp.sqrt(var + eps) * g + b

    relu = jax.nn.relu
    sel_e = relu(selected @ p["w_sel"] + p["b_sel"])
    bud_e = relu(budget @ p["w_bud"] + p["b_bud"])
    u_e = relu(u @ p["w_u"] + p["b_u"])
    t_e = relu(t @ p["w_t"] + p["b_t"])
    c = jnp.concatenate([sel_e, bud_e, u_e, t_e], axis=1)
    x = relu(ln(c @ p["w1"] + p["b1"], p["g1"], p["be1"]))
    x = relu(ln(x @ p["w2"] + p["b2"], p["g2"], p["be2"]))
    x = relu(ln(x @ p["w3"] + p["b3"], p["g3"], p["be3"]))
    x = relu(ln(x @ p["w4"] + p["b4"], p["g4"], p["be4"]))
    return jax.nn.sigmoid(x @ p["w5"] + p["b5"])


# -----------------------------------------------------------------------------
if __name__ == "__main__":
    NUM_ITEMS = 16
    EMBEDDING_DIM = 32
    HIDDEN_DIM = 64

    key = jax.random.PRNGKey(0)
    kp, k1, k2, k3, k4, k5, k6, k7, k8 = jax.random.split(key, 9)
    params = make_params(kp, NUM_ITEMS, EMBEDDING_DIM, HIDDEN_DIM)

    def make_inputs(keys, batch):
        ka, kb_, kc, kd = keys
        sel = jnp.where(jax.random.bernoulli(ka, 0.5, (batch, NUM_ITEMS)),
                        1.0, -1.0).astype(jnp.float32)
        bud = jax.random.uniform(kb_, (batch, 1), jnp.float32, 0.0, 10.0)
        uu = jax.random.normal(kc, (batch, NUM_ITEMS), jnp.float32)
        tt = jax.random.normal(kd, (batch, NUM_ITEMS), jnp.float32)
        return sel, bud, uu, tt

    kw = dict(num_items=NUM_ITEMS, embedding_dim=EMBEDDING_DIM,
              hidden_dim=HIDDEN_DIM)

    # --- exactness check: f32 matmul operands, small batch (no grid) --------
    sel, bud, uu, tt = make_inputs((k1, k2, k3, k4), 8)
    ref = reference_forward(sel, bud, uu, tt, params)
    w32, v32 = pack_params(params, NUM_ITEMS, EMBEDDING_DIM, HIDDEN_DIM,
                           matmul_dtype=jnp.float32)
    out32 = jax.block_until_ready(
        gflownet_forward(sel, bud, uu, tt, w32, v32, **kw))
    assert out32.shape == (8, 1)
    assert jnp.allclose(out32, ref, atol=1e-5, rtol=1e-5), (out32, ref)

    # --- default bf16 MXU-operand path (f32 accumulate / LN / fc5 / sigmoid) -
    wbf, vbf = pack_params(params, NUM_ITEMS, EMBEDDING_DIM, HIDDEN_DIM)
    outbf = jax.block_until_ready(
        gflownet_forward(sel, bud, uu, tt, wbf, vbf, **kw))
    assert outbf.shape == (8, 1)
    assert jnp.allclose(outbf, ref, atol=2e-2, rtol=2e-2), (outbf, ref)

    # --- large batch: even "parallel" batch grid (tile=512, 4 tiles), bf16 --
    selL, budL, uL, tL = make_inputs((k5, k6, k7, k8), 2048)
    refL = reference_forward(selL, budL, uL, tL, params)
    outL = jax.block_until_ready(
        gflownet_forward(selL, budL, uL, tL, wbf, vbf, batch_tile=512, **kw))
    assert outL.shape == (2048, 1)
    assert jnp.allclose(outL, refL, atol=3e-2, rtol=3e-2)

    print("KERNEL_OK")
</pallas_src>

<mosaic_0001>
module attributes {stable_mosaic.version = 11 : i64} {
  func.func @kernel(%arg0: memref<8x16xf32, #tpu.memory_space<vmem>>, %arg1: memref<8x1xf32, #tpu.memory_space<vmem>>, %arg2: memref<8x16xf32, #tpu.memory_space<vmem>>, %arg3: memref<8x16xf32, #tpu.memory_space<vmem>>, %arg4: memref<304x128xf32, #tpu.memory_space<vmem>>, %arg5: memref<16x128xf32, #tpu.memory_space<vmem>>, %arg6: memref<1x8xf32, #tpu.memory_space<vmem>>) attributes {dimension_semantics = [], scalar_prefetch = 0 : i64, scratch_operands = 0 : i64, tpu.core_type = #tpu.core_type<tc>} {
    %c0 = arith.constant 0 : index
    %c0_0 = arith.constant 0 : index
    %0 = vector.load %arg0[%c0, %c0_0] : memref<8x16xf32, #tpu.memory_space<vmem>>, vector<8x16xf32>
    %c0_1 = arith.constant 0 : index
    %c0_2 = arith.constant 0 : index
    %1 = vector.load %arg1[%c0_1, %c0_2] : memref<8x1xf32, #tpu.memory_space<vmem>>, vector<8x1xf32>
    %c0_3 = arith.constant 0 : index
    %c0_4 = arith.constant 0 : index
    %2 = vector.load %arg2[%c0_3, %c0_4] : memref<8x16xf32, #tpu.memory_space<vmem>>, vector<8x16xf32>
    %c0_5 = arith.constant 0 : index
    %c0_6 = arith.constant 0 : index
    %3 = vector.load %arg3[%c0_5, %c0_6] : memref<8x16xf32, #tpu.memory_space<vmem>>, vector<8x16xf32>
    %cst = arith.constant 0.000000e+00 : f32
    %4 = vector.broadcast %cst : f32 to vector<8x15xf32>
    %5 = tpu.concatenate %0, %1, %2, %3, %4 in 1 : vector<8x16xf32>, vector<8x1xf32>, vector<8x16xf32>, vector<8x16xf32>, vector<8x15xf32> -> vector<8x64xf32>
    %c0_7 = arith.constant 0 : index
    %c0_8 = arith.constant 0 : index
    %6 = vector.load %arg4[%c0_7, %c0_8] : memref<304x128xf32, #tpu.memory_space<vmem>>, vector<64x128xf32>
    %c0_9 = arith.constant 0 : index
    %c0_10 = arith.constant 0 : index
    %7 = vector.load %arg5[%c0_9, %c0_10] : memref<16x128xf32, #tpu.memory_space<vmem>>, vector<1x128xf32>
    %cst_11 = arith.constant dense<0.000000e+00> : vector<8x128xf32>
    %8 = tpu.matmul %5, %6, %cst_11 {dimension_numbers = #tpu.dot_dimension_numbers<[1], [0], [0], [1], [0, 0, 1, 1], [], []>} : vector<8x64xf32>, vector<64x128xf32>, vector<8x128xf32> -> vector<8x128xf32>
    %9 = vector.broadcast %7 : vector<1x128xf32> to vector<8x128xf32>
    %10 = arith.addf %8, %9 : vector<8x128xf32>
    %cst_12 = arith.constant 0.000000e+00 : f32
    %11 = vector.broadcast %cst_12 : f32 to vector<8x128xf32>
    %12 = arith.maximumf %10, %11 : vector<8x128xf32>
    %c64 = arith.constant 64 : index
    %c0_13 = arith.constant 0 : index
    %13 = vector.load %arg4[%c64, %c0_13] : memref<304x128xf32, #tpu.memory_space<vmem>>, vector<128x64xf32>
    %c1 = arith.constant 1 : index
    %c0_14 = arith.constant 0 : index
    %14 = vector.load %arg5[%c1, %c0_14] : memref<16x128xf32, #tpu.memory_space<vmem>>, vector<1x64xf32>
    %cst_15 = arith.constant dense<0.000000e+00> : vector<8x64xf32>
    %15 = tpu.matmul %12, %13, %cst_15 {dimension_numbers = #tpu.dot_dimension_numbers<[1], [0], [0], [1], [0, 0, 1, 1], [], []>} : vector<8x128xf32>, vector<128x64xf32>, vector<8x64xf32> -> vector<8x64xf32>
    %16 = vector.broadcast %14 : vector<1x64xf32> to vector<8x64xf32>
    %17 = arith.addf %15, %16 : vector<8x64xf32>
    %c2 = arith.constant 2 : index
    %c0_16 = arith.constant 0 : index
    %18 = vector.load %arg5[%c2, %c0_16] : memref<16x128xf32, #tpu.memory_space<vmem>>, vector<1x64xf32>
    %c3 = arith.constant 3 : index
    %c0_17 = arith.constant 0 : index
    %19 = vector.load %arg5[%c3, %c0_17] : memref<16x128xf32, #tpu.memory_space<vmem>>, vector<1x64xf32>
    %cst_18 = arith.constant dense<0.000000e+00> : vector<8xf32>
    %20 = vector.multi_reduction <add>, %17, %cst_18 [1] : vector<8x64xf32> to vector<8xf32>
    %21 = vector.shape_cast %20 : vector<8xf32> to vector<8x1xf32>
    %cst_19 = arith.constant 1.562500e-02 : f32
    %22 = vector.broadcast %cst_19 : f32 to vector<8x1xf32>
    %23 = arith.mulf %21, %22 : vector<8x1xf32>
    %24 = arith.mulf %17, %17 : vector<8x64xf32>
    %cst_20 = arith.constant dense<0.000000e+00> : vector<8xf32>
    %25 = vector.multi_reduction <add>, %24, %cst_20 [1] : vector<8x64xf32> to vector<8xf32>
    %26 = vector.shape_cast %25 : vector<8xf32> to vector<8x1xf32>
    %cst_21 = arith.constant 1.562500e-02 : f32
    %27 = vector.broadcast %cst_21 : f32 to vector<8x1xf32>
    %28 = arith.mulf %26, %27 : vector<8x1xf32>
    %29 = arith.mulf %23, %23 : vector<8x1xf32>
    %30 = arith.subf %28, %29 : vector<8x1xf32>
    %31 = vector.broadcast %23 : vector<8x1xf32> to vector<8x64xf32>
    %32 = arith.subf %17, %31 : vector<8x64xf32>
    %cst_22 = arith.constant 9.99999974E-6 : f32
    %33 = vector.broadcast %cst_22 : f32 to vector<8x1xf32>
    %34 = arith.addf %30, %33 : vector<8x1xf32>
    %35 = math.rsqrt %34 : vector<8x1xf32>
    %36 = vector.broadcast %35 : vector<8x1xf32> to vector<8x64xf32>
    %37 = arith.mulf %32, %36 : vector<8x64xf32>
    %38 = vector.broadcast %18 : vector<1x64xf32> to vector<8x64xf32>
    %39 = arith.mulf %37, %38 : vector<8x64xf32>
    %40 = vector.broadcast %19 : vector<1x64xf32> to vector<8x64xf32>
    %41 = arith.addf %39, %40 : vector<8x64xf32>
    %cst_23 = arith.constant 0.000000e+00 : f32
    %42 = vector.broadcast %cst_23 : f32 to vector<8x64xf32>
    %43 = arith.maximumf %41, %42 : vector<8x64xf32>
    %c192 = arith.constant 192 : index
    %c0_24 = arith.constant 0 : index
    %44 = vector.load %arg4[%c192, %c0_24] : memref<304x128xf32, #tpu.memory_space<vmem>>, vector<64x32xf32>
    %c4 = arith.constant 4 : index
    %c0_25 = arith.constant 0 : index
    %45 = vector.load %arg5[%c4, %c0_25] : memref<16x128xf32, #tpu.memory_space<vmem>>, vector<1x32xf32>
    %cst_26 = arith.constant dense<0.000000e+00> : vector<8x32xf32>
    %46 = tpu.matmul %43, %44, %cst_26 {dimension_numbers = #tpu.dot_dimension_numbers<[1], [0], [0], [1], [0, 0, 1, 1], [], []>} : vector<8x64xf32>, vector<64x32xf32>, vector<8x32xf32> -> vector<8x32xf32>
    %47 = vector.broadcast %45 : vector<1x32xf32> to vector<8x32xf32>
    %48 = arith.addf %46, %47 : vector<8x32xf32>
    %c5 = arith.constant 5 : index
    %c0_27 = arith.constant 0 : index
    %49 = vector.load %arg5[%c5, %c0_27] : memref<16x128xf32, #tpu.memory_space<vmem>>, vector<1x32xf32>
    %c6 = arith.constant 6 : index
    %c0_28 = arith.constant 0 : index
    %50 = vector.load %arg5[%c6, %c0_28] : memref<16x128xf32, #tpu.memory_space<vmem>>, vector<1x32xf32>
    %cst_29 = arith.constant dense<0.000000e+00> : vector<8xf32>
    %51 = vector.multi_reduction <add>, %48, %cst_29 [1] : vector<8x32xf32> to vector<8xf32>
    %52 = vector.shape_cast %51 : vector<8xf32> to vector<8x1xf32>
    %cst_30 = arith.constant 3.125000e-02 : f32
    %53 = vector.broadcast %cst_30 : f32 to vector<8x1xf32>
    %54 = arith.mulf %52, %53 : vector<8x1xf32>
    %55 = arith.mulf %48, %48 : vector<8x32xf32>
    %cst_31 = arith.constant dense<0.000000e+00> : vector<8xf32>
    %56 = vector.multi_reduction <add>, %55, %cst_31 [1] : vector<8x32xf32> to vector<8xf32>
    %57 = vector.shape_cast %56 : vector<8xf32> to vector<8x1xf32>
    %cst_32 = arith.constant 3.125000e-02 : f32
    %58 = vector.broadcast %cst_32 : f32 to vector<8x1xf32>
    %59 = arith.mulf %57, %58 : vector<8x1xf32>
    %60 = arith.mulf %54, %54 : vector<8x1xf32>
    %61 = arith.subf %59, %60 : vector<8x1xf32>
    %62 = vector.broadcast %54 : vector<8x1xf32> to vector<8x32xf32>
    %63 = arith.subf %48, %62 : vector<8x32xf32>
    %cst_33 = arith.constant 9.99999974E-6 : f32
    %64 = vector.broadcast %cst_33 : f32 to vector<8x1xf32>
    %65 = arith.addf %61, %64 : vector<8x1xf32>
    %66 = math.rsqrt %65 : vector<8x1xf32>
    %67 = vector.broadcast %66 : vector<8x1xf32> to vector<8x32xf32>
    %68 = arith.mulf %63, %67 : vector<8x32xf32>
    %69 = vector.broadcast %49 : vector<1x32xf32> to vector<8x32xf32>
    %70 = arith.mulf %68, %69 : vector<8x32xf32>
    %71 = vector.broadcast %50 : vector<1x32xf32> to vector<8x32xf32>
    %72 = arith.addf %70, %71 : vector<8x32xf32>
    %cst_34 = arith.constant 0.000000e+00 : f32
    %73 = vector.broadcast %cst_34 : f32 to vector<8x32xf32>
    %74 = arith.maximumf %72, %73 : vector<8x32xf32>
    %c256 = arith.constant 256 : index
    %c0_35 = arith.constant 0 : index
    %75 = vector.load %arg4[%c256, %c0_35] : memref<304x128xf32, #tpu.memory_space<vmem>>, vector<32x16xf32>
    %c7 = arith.constant 7 : index
    %c0_36 = arith.constant 0 : index
    %76 = vector.load %arg5[%c7, %c0_36] : memref<16x128xf32, #tpu.memory_space<vmem>>, vector<1x16xf32>
    %cst_37 = arith.constant dense<0.000000e+00> : vector<8x16xf32>
    %77 = tpu.matmul %74, %75, %cst_37 {dimension_numbers = #tpu.dot_dimension_numbers<[1], [0], [0], [1], [0, 0, 1, 1], [], []>} : vector<8x32xf32>, vector<32x16xf32>, vector<8x16xf32> -> vector<8x16xf32>
    %78 = vector.broadcast %76 : vector<1x16xf32> to vector<8x16xf32>
    %79 = arith.addf %77, %78 : vector<8x16xf32>
    %c8 = arith.constant 8 : index
    %c0_38 = arith.constant 0 : index
    %80 = vector.load %arg5[%c8, %c0_38] : memref<16x128xf32, #tpu.memory_space<vmem>>, vector<1x16xf32>
    %c9 = arith.constant 9 : index
    %c0_39 = arith.constant 0 : index
    %81 = vector.load %arg5[%c9, %c0_39] : memref<16x128xf32, #tpu.memory_space<vmem>>, vector<1x16xf32>
    %cst_40 = arith.constant dense<0.000000e+00> : vector<8xf32>
    %82 = vector.multi_reduction <add>, %79, %cst_40 [1] : vector<8x16xf32> to vector<8xf32>
    %83 = vector.shape_cast %82 : vector<8xf32> to vector<8x1xf32>
    %cst_41 = arith.constant 6.250000e-02 : f32
    %84 = vector.broadcast %cst_41 : f32 to vector<8x1xf32>
    %85 = arith.mulf %83, %84 : vector<8x1xf32>
    %86 = arith.mulf %79, %79 : vector<8x16xf32>
    %cst_42 = arith.constant dense<0.000000e+00> : vector<8xf32>
    %87 = vector.multi_reduction <add>, %86, %cst_42 [1] : vector<8x16xf32> to vector<8xf32>
    %88 = vector.shape_cast %87 : vector<8xf32> to vector<8x1xf32>
    %cst_43 = arith.constant 6.250000e-02 : f32
    %89 = vector.broadcast %cst_43 : f32 to vector<8x1xf32>
    %90 = arith.mulf %88, %89 : vector<8x1xf32>
    %91 = arith.mulf %85, %85 : vector<8x1xf32>
    %92 = arith.subf %90, %91 : vector<8x1xf32>
    %93 = vector.broadcast %85 : vector<8x1xf32> to vector<8x16xf32>
    %94 = arith.subf %79, %93 : vector<8x16xf32>
    %cst_44 = arith.constant 9.99999974E-6 : f32
    %95 = vector.broadcast %cst_44 : f32 to vector<8x1xf32>
    %96 = arith.addf %92, %95 : vector<8x1xf32>
    %97 = math.rsqrt %96 : vector<8x1xf32>
    %98 = vector.broadcast %97 : vector<8x1xf32> to vector<8x16xf32>
    %99 = arith.mulf %94, %98 : vector<8x16xf32>
    %100 = vector.broadcast %80 : vector<1x16xf32> to vector<8x16xf32>
    %101 = arith.mulf %99, %100 : vector<8x16xf32>
    %102 = vector.broadcast %81 : vector<1x16xf32> to vector<8x16xf32>
    %103 = arith.addf %101, %102 : vector<8x16xf32>
    %cst_45 = arith.constant 0.000000e+00 : f32
    %104 = vector.broadcast %cst_45 : f32 to vector<8x16xf32>
    %105 = arith.maximumf %103, %104 : vector<8x16xf32>
    %c288 = arith.constant 288 : index
    %c0_46 = arith.constant 0 : index
    %106 = vector.load %arg4[%c288, %c0_46] : memref<304x128xf32, #tpu.memory_space<vmem>>, vector<16x8xf32>
    %c10 = arith.constant 10 : index
    %c0_47 = arith.constant 0 : index
    %107 = vector.load %arg5[%c10, %c0_47] : memref<16x128xf32, #tpu.memory_space<vmem>>, vector<1x8xf32>
    %cst_48 = arith.constant dense<0.000000e+00> : vector<8x8xf32>
    %108 = tpu.matmul %105, %106, %cst_48 {dimension_numbers = #tpu.dot_dimension_numbers<[1], [0], [0], [1], [0, 0, 1, 1], [], []>} : vector<8x16xf32>, vector<16x8xf32>, vector<8x8xf32> -> vector<8x8xf32>
    %109 = vector.broadcast %107 : vector<1x8xf32> to vector<8x8xf32>
    %110 = arith.addf %108, %109 : vector<8x8xf32>
    %c11 = arith.constant 11 : index
    %c0_49 = arith.constant 0 : index
    %111 = vector.load %arg5[%c11, %c0_49] : memref<16x128xf32, #tpu.memory_space<vmem>>, vector<1x8xf32>
    %c12 = arith.constant 12 : index
    %c0_50 = arith.constant 0 : index
    %112 = vector.load %arg5[%c12, %c0_50] : memref<16x128xf32, #tpu.memory_space<vmem>>, vector<1x8xf32>
    %cst_51 = arith.constant dense<0.000000e+00> : vector<8xf32>
    %113 = vector.multi_reduction <add>, %110, %cst_51 [1] : vector<8x8xf32> to vector<8xf32>
    %114 = vector.shape_cast %113 : vector<8xf32> to vector<8x1xf32>
    %cst_52 = arith.constant 1.250000e-01 : f32
    %115 = vector.broadcast %cst_52 : f32 to vector<8x1xf32>
    %116 = arith.mulf %114, %115 : vector<8x1xf32>
    %117 = arith.mulf %110, %110 : vector<8x8xf32>
    %cst_53 = arith.constant dense<0.000000e+00> : vector<8xf32>
    %118 = vector.multi_reduction <add>, %117, %cst_53 [1] : vector<8x8xf32> to vector<8xf32>
    %119 = vector.shape_cast %118 : vector<8xf32> to vector<8x1xf32>
    %cst_54 = arith.constant 1.250000e-01 : f32
    %120 = vector.broadcast %cst_54 : f32 to vector<8x1xf32>
    %121 = arith.mulf %119, %120 : vector<8x1xf32>
    %122 = arith.mulf %116, %116 : vector<8x1xf32>
    %123 = arith.subf %121, %122 : vector<8x1xf32>
    %124 = vector.broadcast %116 : vector<8x1xf32> to vector<8x8xf32>
    %125 = arith.subf %110, %124 : vector<8x8xf32>
    %cst_55 = arith.constant 9.99999974E-6 : f32
    %126 = vector.broadcast %cst_55 : f32 to vector<8x1xf32>
    %127 = arith.addf %123, %126 : vector<8x1xf32>
    %128 = math.rsqrt %127 : vector<8x1xf32>
    %129 = vector.broadcast %128 : vector<8x1xf32> to vector<8x8xf32>
    %130 = arith.mulf %125, %129 : vector<8x8xf32>
    %131 = vector.broadcast %111 : vector<1x8xf32> to vector<8x8xf32>
    %132 = arith.mulf %130, %131 : vector<8x8xf32>
    %133 = vector.broadcast %112 : vector<1x8xf32> to vector<8x8xf32>
    %134 = arith.addf %132, %133 : vector<8x8xf32>
    %cst_56 = arith.constant 0.000000e+00 : f32
    %135 = vector.broadcast %cst_56 : f32 to vector<8x8xf32>
    %136 = arith.maximumf %134, %135 : vector<8x8xf32>
    %c14 = arith.constant 14 : index
    %c0_57 = arith.constant 0 : index
    %137 = vector.load %arg5[%c14, %c0_57] : memref<16x128xf32, #tpu.memory_space<vmem>>, vector<1x8xf32>
    %c13 = arith.constant 13 : index
    %c0_58 = arith.constant 0 : index
    %138 = vector.load %arg5[%c13, %c0_58] : memref<16x128xf32, #tpu.memory_space<vmem>>, vector<1x1xf32>
    %139 = tpu.transpose %136, [1, 0] : vector<8x8xf32> -> vector<8x8xf32>
    %cst_59 = arith.constant dense<0.000000e+00> : vector<1x8xf32>
    %140 = tpu.matmul %137, %139, %cst_59 {dimension_numbers = #tpu.dot_dimension_numbers<[1], [0], [0], [1], [0, 0, 1, 1], [], []>} : vector<1x8xf32>, vector<8x8xf32>, vector<1x8xf32> -> vector<1x8xf32>
    %141 = vector.broadcast %138 : vector<1x1xf32> to vector<1x8xf32>
    %142 = arith.addf %140, %141 : vector<1x8xf32>
    %143 = arith.negf %142 : vector<1x8xf32>
    %144 = math.exp %143 : vector<1x8xf32>
    %cst_60 = arith.constant 1.000000e+00 : f32
    %145 = vector.broadcast %cst_60 : f32 to vector<1x8xf32>
    %146 = arith.addf %145, %144 : vector<1x8xf32>
    %147 = arith.divf %145, %146 : vector<1x8xf32>
    %c0_61 = arith.constant 0 : index
    %c0_62 = arith.constant 0 : index
    %148 = vector.load %arg6[%c0_61, %c0_62] : memref<1x8xf32, #tpu.memory_space<vmem>>, vector<1x8xf32>
    tpu.vector_store %arg6[%c0_61, %c0_62], %147 {strides = array<i32>} : memref<1x8xf32, #tpu.memory_space<vmem>>, vector<1x8xf32>,
    return
  }
}

</mosaic_0001>

<bundles_post_ra>
// kernel: tpu_custom_call.1
= control target key start
LH: loop header
LB: loop body
LE: loop exit
PB: predicated region body
PF: predicated region fallthrough
CT: control target
= control target key end

     0   :  { %11 = vsyncpa [#allocation3], 0  ;;  %s723_s0 = inlined_call_operand.vmem [shape: f32[8,16], index: 0, kind: input, shape index: {}]   ;;  %s724_s1 = inlined_call_operand.vmem [shape: f32[8,1], index: 1, kind: input, shape index: {}]   ;;  %s725_s2 = inlined_call_operand.hbm [shape: f32[8,16], index: 2, kind: input, shape index: {}]   ;;  %s726_s3 = inlined_call_operand.hbm [shape: f32[8,16], index: 3, kind: input, shape index: {}]   ;;  %s727_s4 = inlined_call_operand.hbm [shape: f32[304,128], index: 4, kind: input, shape index: {}]   ;;  %s728_s5 = inlined_call_operand.hbm [shape: f32[16,128], index: 5, kind: input, shape index: {}]   ;;  %s729_s6 = inlined_call_operand.hbm [shape: f32[1,8], index: 6, kind: output, shape index: {}]  }
   0x1   :  { %12 = vsyncpa [#allocation6], 0 }
   0x2   :  { %13 = vsyncpa [#allocation9], 0  ;;  %s35_s23 = sshll.u32 %s726_s3, 4  ;;  %s36_s23 = int_to_ptr.hbm [resolvable:$true] %s35_s23 }
   0x3   :  { %14 = vsyncpa [#allocation4], 0  ;;  %s641_s24 = smov [#allocation5]   ;;  %s24_s28 = sshll.u32 %s725_s2, 4  ;;  %s25_s28 = int_to_ptr.hbm [resolvable:$true] %s24_s28 }
   0x4   :  { %s37_s25 = sshll.u32 %s641_s24, 4  ;;  %s642_s29 = smov [#allocation2]   ;;  %s38_s25 = int_to_ptr.vmem [resolvable:$true] %s37_s25 }
   0x5   :  { %40 = dma.hbm_to_vmem [thread:$0]  %s36_s23, 128, %s38_s25, [#allocation6]  }
   0x6   :  { %s26_s30 = sshll.u32 %s642_s29, 4  ;;  %s45_s9 = sshll.u32 %s727_s4, 4  ;;  %s27_s30 = int_to_ptr.vmem [resolvable:$true] %s26_s30  ;;  %s46_s9 = int_to_ptr.hbm [resolvable:$true] %s45_s9 }
   0x7   :  { %29 = dma.hbm_to_vmem [thread:$0]  %s25_s28, 128, %s27_s30, [#allocation3]  }
   0x8   :  { %s643_s3 = smov [#allocation7]   ;;  %s58_s13 = sshll.u32 %s728_s5, 4  ;;  %s59_s13 = int_to_ptr.hbm [resolvable:$true] %s58_s13 }
   0x9   :  { %s47_s10 = sshll.u32 %s643_s3, 4  ;;  %s644_s14 = smov 128   ;;  %s48_s10 = int_to_ptr.vmem [resolvable:$true] %s47_s10 }
   0xa   :  { %s645_s2 = smov 8   ;;  %s646_s15 = smov [#allocation8]  }
   0xb   :  { %53 = dma.hbm_to_vmem [thread:$0]  %s46_s9, 4864, %s48_s10, [#allocation6], %s644_s14, %s644_s14, %s645_s2  }
   0xc   :  { %s60_s16 = sshll.u32 %s646_s15, 4  ;;  %s61_s16 = int_to_ptr.vmem [resolvable:$true] %s60_s16 }
   0xd   :  { %66 = dma.hbm_to_vmem [thread:$0]  %s59_s13, 256, %s61_s16, [#allocation9], %s644_s14, %s644_s14, %s645_s2  }
   0xe   :  { %633 = dma.done.wait [#allocation3], 128  }
   0xf   :  { %634 = vsyncadd [#allocation3], 4294967168 }
  0x10   :  { %635 = dma.done.wait [#allocation6], 4992  }
  0x11   :  { %636 = vsyncadd [#allocation6], 4294962304 }
  0x12   :  { %637 = dma.done.wait [#allocation9], 256  }
  0x13   :  { %638 = vsyncadd [#allocation9], 4294967040  ;;  %v84_v0 = vld [vmem:[%s724_s1] sm:$0xff]  ;;  %v86_v1 = vld [vmem:[#allocation5] sm:$0xff]  ;;  %s647_s5 = smov 16   ;;  %s648_s18 = smov 33  }
  0x14   :  { %88 = vrot.lane.b32.xlu0 %v84_v0, %s647_s5  ;;  %96 = vrot.lane.b32.xlu1 %v86_v1, %s648_s18  ;;  %v114_v2 = vld [vmem:[#allocation7 + $0x38] sm:$0xff]  ;;  %v113_v3 = vld [vmem:[#allocation7 + $0x30] sm:$0xff]  ;;  %s649_s19 = smov 17   ;;  %v112_v5 = vld [vmem:[#allocation7 + $0x28] sm:$0xff]  ;;  %vm99_vm0 = vcmask 130048   ;;  %vm101_vm1 = vcmask 138240  }
  0x15   :  { %129 = vmatpush.msra.mxu0 %v114_v2  ;;  %v85_v4 = vld [vmem:[#allocation2] sm:$0xff]  ;;  %v111_v6 = vld [vmem:[#allocation7 + $0x20] sm:$0xff]  ;;  %v110_v7 = vld [vmem:[#allocation7 + $0x18] sm:$0xff]  ;;  %vm103_vm2 = vcmask 269312   ;;  %vm105_vm3 = vcmask 400384   ;;  %vm117_vm4 = vcmask 523264  }
  0x16   :  { %v109_v8 = vld [vmem:[#allocation7 + $0x10] sm:$0xff]  ;;  %v108_v9 = vld [vmem:[#allocation7 + $0x8] sm:$0xff]  ;;  %v107_v10 = vld [vmem:[#allocation7] sm:$0xff]  ;;  %vm246_vm8 = vcmask 261120   ;;  %vm365_vm15 = vcmask 64512   ;;  %s456_s24 = sshll.u32 %s729_s6, 4  ;;  %s457_s24 = int_to_ptr.hbm [resolvable:$true] %s456_s24 }
  0x17   :  { %130 = vmatpush.msra.mxu0 %v113_v3  ;;  %v157_v11 = vld [vmem:[#allocation7 + $0xb8] sm:$0xff]  ;;  %v156_v12 = vld [vmem:[#allocation7 + $0xb0] sm:$0xff]  ;;  %v155_v13 = vld [vmem:[#allocation7 + $0xa8] sm:$0xff] }
  0x18   :  { %160 = vmatpush.msra.mxu1 %v157_v11  ;;  %v154_v14 = vld [vmem:[#allocation7 + $0xa0] sm:$0xff]  ;;  %v153_v15 = vld [vmem:[#allocation7 + $0x98] sm:$0xff]  ;;  %v152_v16 = vld [vmem:[#allocation7 + $0x90] sm:$0xff] }
  0x19   :  { %131 = vmatpush.msra.mxu0 %v112_v5  ;;  %v151_v17 = vld [vmem:[#allocation7 + $0x88] sm:$0xff]  ;;  %v150_v18 = vld [vmem:[#allocation7 + $0x80] sm:$0xff]  ;;  %v149_v19 = vld [vmem:[#allocation7 + $0x78] sm:$0xff] }
  0x1a   :  { %161 = vmatpush.msra.mxu1 %v156_v12  ;;  %v148_v20 = vld [vmem:[#allocation7 + $0x70] sm:$0xff]  ;;  %v147_v21 = vld [vmem:[#allocation7 + $0x68] sm:$0xff]  ;;  %v146_v23 = vld [vmem:[#allocation7 + $0x60] sm:$0xff] }
  0x1b   :  { %132 = vmatpush.msra.mxu0 %v111_v6  ;;  %v145_v24 = vld [vmem:[#allocation7 + $0x58] sm:$0xff]  ;;  %v83_v25 = vld [vmem:[%s723_s0] sm:$0xff]  ;;  %v143_v33 = vld [vmem:[#allocation7 + $0x48] sm:$0xff]  ;;  %s651_s0 = smov [#allocation10]  }
  0x1c   :  { %92 = vrot.lane.b32.xlu0 %v85_v4, %s649_s19  ;;  %162 = vmatpush.msra.mxu1 %v155_v13  ;;  %v144_v32 = vld [vmem:[#allocation7 + $0x50] sm:$0xff]  ;;  %v142_v34 = vld [vmem:[#allocation7 + $0x40] sm:$0xff]  ;;  %v218_v45 = vld [vmem:[#allocation7 + $0xf8] sm:$0xff]  ;;  %s454_s21 = sshll.u32 %s651_s0, 4  ;;  %s455_s21 = int_to_ptr.vmem [resolvable:$true] %s454_s21 }
  0x1d   :  { %133 = vmatpush.msra.mxu0 %v110_v7  ;;  %v488_v35 = vld [vmem:[#allocation8] ss:$0 sm:$0xff]  ;;  %v489_v39 = vld [vmem:[#allocation8 + $0x1] ss:$0 sm:$0xff]  ;;  %232 = vmatpush.msra.mxu2 %v218_v45  ;;  %v216_v47 = vld [vmem:[#allocation7 + $0xe8] sm:$0xff] }
  0x1e   :  { %163 = vmatpush.msra.mxu1 %v154_v14  ;;  %v217_v46 = vld [vmem:[#allocation7 + $0xf0] sm:$0xff]  ;;  %v215_v48 = vld [vmem:[#allocation7 + $0xe0] sm:$0xff]  ;;  %v214_v49 = vld [vmem:[#allocation7 + $0xd8] sm:$0xff] }
  0x1f   :  { %134 = vmatpush.msra.mxu0 %v109_v8  ;;  %233 = vmatpush.msra.mxu2 %v217_v46  ;;  %v213_v50 = vld [vmem:[#allocation7 + $0xd0] sm:$0xff]  ;;  %v212_v51 = vld [vmem:[#allocation7 + $0xc8] sm:$0xff]  ;;  %v211_v52 = vld [vmem:[#allocation7 + $0xc0] sm:$0xff] }
  0x20   :  { %164 = vmatpush.msra.mxu1 %v153_v15  ;;  %v490_v3 = vld [vmem:[#allocation8 + $0x2] ss:$0 sm:$0xff]  ;;  %v491_v6 = vld [vmem:[#allocation8 + $0x3] ss:$0 sm:$0xff] }
  0x21   :  { %135 = vmatpush.msra.mxu0 %v108_v9  ;;  %234 = vmatpush.msra.mxu2 %v216_v47 }
  0x22   :  { %165 = vmatpush.msra.mxu1 %v152_v16  ;;  %v279_v16 = vld [vmem:[#allocation7 + $0x118] sm:$0xff] }
  0x23   :  { %136 = vmatpush.msra.mxu0 %v107_v10  ;;  %235 = vmatpush.msra.mxu2 %v215_v48  ;;  %v492_v10 = vld [vmem:[#allocation8 + $0x4] ss:$0 sm:$0xff]  ;;  %v337_v48 = vld [vmem:[#allocation7 + $0x128] sm:$0xff] }
  0x24   :  { %166 = vmatpush.msra.mxu1 %v151_v17  ;;  %v278_v17 = vld [vmem:[#allocation7 + $0x110] sm:$0xff]  ;;  %297 = vmatpush.msra.mxu3 %v279_v16 }
  0x25   :  { %236 = vmatpush.msra.mxu2 %v214_v49  ;;  %v336_v49 = vld [vmem:[#allocation7 + $0x120] sm:$0xff] }
  0x26   :  { %167 = vmatpush.msra.mxu1 %v150_v18  ;;  %v277_v18 = vld [vmem:[#allocation7 + $0x108] sm:$0xff]  ;;  %298 = vmatpush.msra.mxu3 %v278_v17 }
  0x27   :  { %237 = vmatpush.msra.mxu2 %v213_v50 }
  0x28   :  { %168 = vmatpush.msra.mxu1 %v149_v19  ;;  %v276_v19 = vld [vmem:[#allocation7 + $0x100] sm:$0xff]  ;;  %299 = vmatpush.msra.mxu3 %v277_v18  ;;  %v396_v18 = vld [vmem:[#allocation8 + $0xd] sm:$0x1] }
  0x29   :  { %238 = vmatpush.msra.mxu2 %v212_v51 }
  0x2a   :  { %169 = vmatpush.msra.mxu1 %v148_v20  ;;  %300 = vmatpush.msra.mxu3 %v276_v19 }
  0x2b   :  { %239 = vmatpush.msra.mxu2 %v211_v52 }
  0x2c   :  { %170 = vmatpush.msra.mxu1 %v147_v21  ;;  %357 = vmatpush.msrb.mxu3 %v337_v48 }
  0x2e   :  { %171 = vmatpush.msra.mxu1 %v146_v23  ;;  %358 = vmatpush.msrb.mxu3 %v336_v49 }
  0x30   :  { %172 = vmatpush.msra.mxu1 %v145_v24 }
  0x32   :  { %173 = vmatpush.msra.mxu1 %v144_v32 }
  0x34   :  { %174 = vmatpush.msra.mxu1 %v143_v33 }
  0x36   :  { %175 = vmatpush.msra.mxu1 %v142_v34  ;;  %v493_v34 = vld [vmem:[#allocation8 + $0x5] ss:$0 sm:$0xff] }
  0x86   :  { %v89_v22 = vpop.permute.xlu0 %88  ;;  %v97_v26 = vpop.permute.xlu1 %96 }
  0x87   :  { %v100_v27 = vsel %vm99_vm0, %v83_v25, %v89_v22 }
  0x8e   :  { %v93_v28 = vpop.permute.xlu0 %92 }
  0x8f   :  { %v102_v29 = vsel %vm101_vm1, %v100_v27, %v93_v28 }
  0x90   :  { %v104_v30 = vsel %vm103_vm2, %v102_v29, %v97_v26 }
  0x91   :  { %v106_v31 = vsel %vm105_vm3, %v104_v30, 0.0 }
  0x92   :  { %468 = vmatmul.msk.f32.vlgmr.msra.gmra.mxu0 %vm117_vm4, %v106_v31 }
 0x10f   :  { %v138_v36 = vpop.f32.mrf.mxu0 }
 0x110   :  { %v139_v37 = vadd.f32 %v488_v35, %v138_v36 }
 0x112   :  { %v141_v38 = vmax.f32 %v139_v37, 0.0  ;;  %v494_v37 = vld [vmem:[#allocation8 + $0x6] ss:$0 sm:$0xff] }
 0x114   :  { %176 = vmatmul.f32.vlgmr.msra.gmra.mxu1 %v141_v38 }
 0x191   :  { %v177_v40 = vpop.f32.mrf.mxu1 }
 0x192   :  { %v178_v41 = vadd.f32 %v489_v39, %v177_v40 }
 0x194   :  { %v182_v42 = vsel %vm117_vm4, %v178_v41, 0.0  ;;  %v186_v43 = vmul.f32 %v178_v41, %v178_v41 }
 0x195   :  { %183 = vadd.xlane.f32.xlu1 %v182_v42 }
 0x196   :  { %v187_v44 = vsel %vm117_vm4, %v186_v43, 0.0 }
 0x197   :  { %188 = vadd.xlane.f32.xlu2 %v187_v44 }
 0x208   :  { %v184_v53 = vpop.xlane.xlu1 %183 }
 0x209   :  { %v185_v54 = vmul.f32 0.015625, %v184_v53 }
 0x20a   :  { %v189_v55 = vpop.xlane.xlu2 %188 }
 0x20b   :  { %v191_v56 = vmul.f32 %v185_v54, %v185_v54  ;;  %v190_v57 = vmul.f32 0.015625, %v189_v55  ;;  %v193_v2 = vsub.f32 %v178_v41, %v185_v54  ;;  %v495_v41 = vld [vmem:[#allocation8 + $0x7] ss:$0 sm:$0xff] }
 0x20d   :  { %v192_v58 = vsub.f32 %v190_v57, %v191_v56 }
 0x20f   :  { %v194_v59 = vadd.f32 1e-05, %v192_v58 }
 0x211   :  { %501 = vrsqrt.f32 %v194_v59  ;;  %vm201_vm6 = vweird.f32 %v194_v59 }
 0x217   :  { %v502_v60 = vpop.eup %501 }
 0x218   :  { %v196_v61 = vmul.f32 %v502_v60, %v194_v59  ;;  %vm202_vm5 = vweird.f32 %v502_v60 }
 0x219   :  { %vm203_vm7 = vmor %vm201_vm6, %vm202_vm5  ;;  %vm447_vm6 = vcmask 57344  }
 0x21a   :  { %v197_v62 = vmul.f32 %v502_v60, %v196_v61 }
 0x21c   :  { %v198_v63 = vmul.f32 0.5, %v197_v62 }
 0x21e   :  { %v199_v0 = vsub.f32 1.5, %v198_v63  ;;  %v496_v63 = vld [vmem:[#allocation8 + $0x8] ss:$0 sm:$0xff] }
 0x220   :  { %v200_v1 = vmul.f32 %v502_v60, %v199_v0 }
 0x222   :  { %v204_v4 = vsel %vm203_vm7, %v502_v60, %v200_v1 }
 0x223   :  { %v205_v5 = vmul.f32 %v204_v4, %v193_v2  ;;  %v497_v2 = vld [vmem:[#allocation8 + $0x9] ss:$0 sm:$0xff] }
 0x225   :  { %v207_v7 = vmul.f32 %v490_v3, %v205_v5 }
 0x227   :  { %v209_v8 = vadd.f32 %v491_v6, %v207_v7  ;;  %v498_v6 = vld [vmem:[#allocation8 + $0xa] ss:$0 sm:$0xff] }
 0x229   :  { %v210_v9 = vmax.f32 %v209_v8, 0.0 }
 0x22b   :  { %469 = vmatmul.msk.f32.vlgmr.msra.gmra.mxu2 %vm117_vm4, %v210_v9 }
 0x2ae   :  { %v241_v11 = vpop.f32.mrf.mxu2 }
 0x2af   :  { %v242_v12 = vadd.f32 %v492_v10, %v241_v11 }
 0x2b1   :  { %v247_v13 = vsel %vm246_vm8, %v242_v12, 0.0  ;;  %v251_v14 = vmul.f32 %v242_v12, %v242_v12 }
 0x2b2   :  { %248 = vadd.xlane.f32.xlu2 %v247_v13 }
 0x2b3   :  { %v252_v15 = vsel %vm246_vm8, %v251_v14, 0.0 }
 0x2b4   :  { %253 = vadd.xlane.f32.xlu0 %v252_v15 }
 0x325   :  { %v249_v20 = vpop.xlane.xlu2 %248 }
 0x326   :  { %v250_v21 = vmul.f32 0.03125, %v249_v20  ;;  %v650_v20 = vmov 0  }
 0x327   :  { %v254_v22 = vpop.xlane.xlu0 %253  ;;  %486 = vset.pattern.permute.xlu2 %v650_v20  ;;  %487 = vset.pattern.permute.xlu0 %v650_v20 }
 0x328   :  { %v256_v23 = vmul.f32 %v250_v21, %v250_v21  ;;  %v255_v24 = vmul.f32 0.03125, %v254_v22  ;;  %v258_v33 = vsub.f32 %v242_v12, %v250_v21 }
 0x32a   :  { %v257_v25 = vsub.f32 %v255_v24, %v256_v23 }
 0x32c   :  { %v259_v26 = vadd.f32 1e-05, %v257_v25 }
 0x32e   :  { %503 = vrsqrt.f32 %v259_v26  ;;  %vm266_vm10 = vweird.f32 %v259_v26 }
 0x334   :  { %v504_v27 = vpop.eup %503 }
 0x335   :  { %v261_v28 = vmul.f32 %v504_v27, %v259_v26  ;;  %vm267_vm9 = vweird.f32 %v504_v27 }
 0x336   :  { %vm268_vm11 = vmor %vm266_vm10, %vm267_vm9 }
 0x337   :  { %v262_v29 = vmul.f32 %v504_v27, %v261_v28  ;;  %v499_v28 = vld [vmem:[#allocation8 + $0xb] ss:$0 sm:$0xff] }
 0x339   :  { %v263_v30 = vmul.f32 0.5, %v262_v29 }
 0x33b   :  { %v264_v31 = vsub.f32 1.5, %v263_v30 }
 0x33d   :  { %v265_v32 = vmul.f32 %v504_v27, %v264_v31  ;;  %v500_v31 = vld [vmem:[#allocation8 + $0xc] ss:$0 sm:$0xff] }
 0x33f   :  { %v269_v35 = vsel %vm268_vm11, %v504_v27, %v265_v32 }
 0x340   :  { %v270_v36 = vmul.f32 %v269_v35, %v258_v33  ;;  %v395_v35 = vld [vmem:[#allocation8 + $0xe] sm:$0x1] }
 0x342   :  { %v272_v38 = vmul.f32 %v493_v34, %v270_v36 }
 0x344   :  { %v274_v39 = vadd.f32 %v494_v37, %v272_v38 }
 0x346   :  { %v275_v40 = vmax.f32 %v274_v39, 0.0 }
 0x348   :  { %470 = vmatmul.msk.f32.vlgmr.msra.gmra.mxu3 %vm246_vm8, %v275_v40 }
 0x3cb   :  { %v302_v42 = vpop.f32.mrf.mxu3 }
 0x3cc   :  { %v303_v43 = vadd.f32 %v495_v41, %v302_v42 }
 0x3ce   :  { %v307_v44 = vsel %vm99_vm0, %v303_v43, 0.0  ;;  %v311_v45 = vmul.f32 %v303_v43, %v303_v43 }
 0x3cf   :  { %308 = vadd.xlane.f32.xlu2 %v307_v44 }
 0x3d0   :  { %v312_v46 = vsel %vm99_vm0, %v311_v45, 0.0 }
 0x3d7   :  { %313 = vadd.xlane.f32.xlu2 %v312_v46 }
 0x442   :  { %v309_v47 = vpop.xlane.xlu2 %308 }
 0x443   :  { %v310_v50 = vmul.f32 0.0625, %v309_v47 }
 0x445   :  { %v316_v52 = vmul.f32 %v310_v50, %v310_v50  ;;  %v318_v62 = vsub.f32 %v303_v43, %v310_v50 }
 0x44a   :  { %v314_v51 = vpop.xlane.xlu2 %313 }
 0x44b   :  { %v315_v53 = vmul.f32 0.0625, %v314_v51 }
 0x44d   :  { %v317_v54 = vsub.f32 %v315_v53, %v316_v52 }
 0x44f   :  { %v319_v55 = vadd.f32 1e-05, %v317_v54 }
 0x451   :  { %505 = vrsqrt.f32 %v319_v55  ;;  %vm326_vm13 = vweird.f32 %v319_v55 }
 0x457   :  { %v506_v56 = vpop.eup %505 }
 0x458   :  { %v321_v57 = vmul.f32 %v506_v56, %v319_v55  ;;  %vm327_vm12 = vweird.f32 %v506_v56 }
 0x459   :  { %vm328_vm14 = vmor %vm326_vm13, %vm327_vm12 }
 0x45a   :  { %v322_v58 = vmul.f32 %v506_v56, %v321_v57 }
 0x45c   :  { %v323_v59 = vmul.f32 0.5, %v322_v58 }
 0x45e   :  { %v324_v60 = vsub.f32 1.5, %v323_v59 }
 0x460   :  { %v325_v61 = vmul.f32 %v506_v56, %v324_v60 }
 0x462   :  { %v329_v0 = vsel %vm328_vm14, %v506_v56, %v325_v61 }
 0x463   :  { %v330_v1 = vmul.f32 %v329_v0, %v318_v62 }
 0x465   :  { %v332_v3 = vmul.f32 %v496_v63, %v330_v1 }
 0x467   :  { %v334_v4 = vadd.f32 %v497_v2, %v332_v3 }
 0x469   :  { %v335_v5 = vmax.f32 %v334_v4, 0.0 }
 0x46b   :  { %471 = vmatmul.msk.f32.vlgmr.msrb.gmra.mxu3 %vm99_vm0, %v335_v5 }
 0x4ee   :  { %v360_v7 = vpop.f32.mrf.mxu3 }
 0x4ef   :  { %v361_v8 = vadd.f32 %v498_v6, %v360_v7 }
 0x4f1   :  { %v366_v9 = vsel %vm365_vm15, %v361_v8, 0.0  ;;  %v370_v10 = vmul.f32 %v361_v8, %v361_v8 }
 0x4f2   :  { %367 = vadd.xlane.f32.xlu2 %v366_v9 }
 0x4f3   :  { %v371_v11 = vsel %vm365_vm15, %v370_v10, 0.0 }
 0x4fa   :  { %372 = vadd.xlane.f32.xlu2 %v371_v11 }
 0x512   :  { %399 = vperm.xlu2 %486, %v396_v18  }
 0x565   :  { %v368_v12 = vpop.xlane.xlu2 %367 }
 0x566   :  { %v369_v13 = vmul.f32 0.125, %v368_v12 }
 0x568   :  { %v375_v15 = vmul.f32 %v369_v13, %v369_v13  ;;  %v377_v27 = vsub.f32 %v361_v8, %v369_v13 }
 0x56d   :  { %v373_v14 = vpop.xlane.xlu2 %372 }
 0x56e   :  { %v374_v16 = vmul.f32 0.125, %v373_v14 }
 0x570   :  { %v376_v17 = vsub.f32 %v374_v16, %v375_v15 }
 0x572   :  { %v378_v19 = vadd.f32 1e-05, %v376_v17 }
 0x574   :  { %507 = vrsqrt.f32 %v378_v19  ;;  %vm385_vm1 = vweird.f32 %v378_v19 }
 0x575   :  { %v400_v36 = vpop.permute.xlu2 %399 }
 0x57a   :  { %v508_v21 = vpop.eup %507 }
 0x57b   :  { %v380_v22 = vmul.f32 %v508_v21, %v378_v19  ;;  %vm386_vm0 = vweird.f32 %v508_v21 }
 0x57c   :  { %vm387_vm2 = vmor %vm385_vm1, %vm386_vm0 }
 0x57d   :  { %v381_v23 = vmul.f32 %v508_v21, %v380_v22 }
 0x57f   :  { %v382_v24 = vmul.f32 0.5, %v381_v23 }
 0x581   :  { %v383_v25 = vsub.f32 1.5, %v382_v24 }
 0x583   :  { %v384_v26 = vmul.f32 %v508_v21, %v383_v25 }
 0x585   :  { %v388_v29 = vsel %vm387_vm2, %v508_v21, %v384_v26 }
 0x586   :  { %v389_v30 = vmul.f32 %v388_v29, %v377_v27 }
 0x588   :  { %v391_v32 = vmul.f32 %v499_v28, %v389_v30 }
 0x58a   :  { %v393_v33 = vadd.f32 %v500_v31, %v391_v32 }
 0x58c   :  { %v394_v34 = vmax.f32 %v393_v33, 0.0 }
 0x58e   :  { %472 = vmatpush.xpose.msk.msrb.mxu0 %vm365_vm15, %v394_v34 }
 0x591   :  { %473 = vmatmul.msk.f32.vlgmr.msrb.gmra.mxu0 %vm365_vm15, %v395_v35 }
 0x60e   :  { %v425_v37 = vpop.f32.mrf.mxu0 }
 0x60f   :  { %v426_v38 = vadd.f32 %v425_v37, %v400_v36 }
 0x611   :  { %v474_v39 = vmul.f32 -1.442695, %v426_v38 }
 0x613   :  { %509 = vpow2.f32 %v474_v39 }
 0x619   :  { %v510_v40 = vpop.eup %509 }
 0x61a   :  { %v431_v41 = vadd.f32 1.0, %v510_v40 }
 0x61c   :  { %511 = vrcp.f32 %v431_v41  ;;  %v443_v45 = vand.u32 2147483648, %v431_v41  ;;  %v441_v47 = vand.u32 2147483647, %v431_v41  ;;  %vm437_vm4 = vweird.f32 %v431_v41 }
 0x61e   :  { %v444_v49 = vor.u32 1.1754944e-38, %v443_v45  ;;  %vm442_vm7 = vcmp.eq.f32.partialorder %v441_v47, 8.507059e+37 }
 0x622   :  { %v512_v42 = vpop.eup %511 }
 0x623   :  { %v433_v43 = vmul.f32 %v512_v42, %v431_v41  ;;  %vm438_vm3 = vweird.f32 %v512_v42 }
 0x624   :  { %vm439_vm5 = vmor %vm437_vm4, %vm438_vm3 }
 0x625   :  { %v434_v44 = vsub.f32 1.0, %v433_v43 }
 0x627   :  { %v435_v46 = vmul.f32 %v512_v42, %v434_v44 }
 0x629   :  { %v436_v48 = vadd.f32 %v512_v42, %v435_v46 }
 0x62b   :  { %v440_v50 = vsel %vm439_vm5, %v512_v42, %v436_v48 }
 0x62c   :  { %v445_v51 = vsel %vm442_vm7, %v444_v49, %v440_v50 }
 0x62d   :  { %448 = vst.msk [vmem:[#allocation10] sm:$0x1] %vm447_vm6, %v445_v51 }
 0x62e   :  { %459 = dma.vmem_to_hbm [thread:$0]  %s455_s21, 16, %s457_s24, [#allocation4]  }
 0x62f   :  { %639 = dma.done.wait [#allocation4], 16  }
 0x630   :  { %640 = vsyncadd [#allocation4], 4294967280 }
 0x631   :  { %464 = vsyncpa [#allocation3], 1 }
 0x632   :  { %465 = vsyncpa [#allocation6], 1 }
 0x633   :  { %466 = vsyncpa [#allocation9], 1 }
 0x634   :  { %467 = vsyncpa [#allocation4], 1 }

</bundles_post_ra>
